<compile_context>
chip_gen: v7x
topology: tpu7x:2x2x1
jax: 0.10.0
libtpu: 0.0.40
codegen_flags: <defaults>
</compile_context>

<pallas_src>
import jax
import jax.numpy as jnp
from jax.experimental import pallas as pl
from jax.experimental.pallas import tpu as pltpu


def variational_h_kernel(x_ref, w_ref, out_ref):
    """x_ref: [B, H] packed activations = [eps(Z) | 1 | state(S) | 0-pad].

    w_ref: [4H+8, H] packed params (see pack_params):
      rows 0:H    fc1 weights (eps rows zero, ones-lane row = b1, state rows = W1)
      rows H:2H   fc2 weights
      rows 2H:3H  mu head   (cols 0:Z = Wmu, rest 0; bmu folded into fc3 bias)
      rows 3H:4H  sigma head (cols 0:Z = 0.5*Wsig, rest 0)
      row 4H+0    b2
      row 4H+1    0.5*bsig (cols 0:Z, rest 0)
      row 4H+2    [-w3 (Z) | -(b3 + w3.bmu) | 0...]
    out_ref: [B, 1]
    """
    H = w_ref.shape[1]

    x = x_ref[...]                                                   # [B, H]

    # fc1 + relu. b1 rides the constant 1.0 lane of x (folded into weight row).
    h1 = jnp.maximum(
        jnp.dot(x, w_ref[0:H, :], preferred_element_type=jnp.float32), 0.0)

    # fc2 + relu (+ b2 broadcast row).
    h2 = jnp.maximum(
        jnp.dot(h1, w_ref[H:2 * H, :], preferred_element_type=jnp.float32)
        + w_ref[4 * H + 0:4 * H + 1, :], 0.0)

    # mu head (no bias: bmu is folded into the fc3 bias constant at pack time).
    mu = jnp.dot(h2, w_ref[2 * H:3 * H, :], preferred_element_type=jnp.float32)

    # 0.5*sigma head (+ 0.5*bsig broadcast row). Lanes >= Z are exactly 0.
    sg = (jnp.dot(h2, w_ref[3 * H:4 * H, :], preferred_element_type=jnp.float32)
          + w_ref[4 * H + 1:4 * H + 2, :])

    # Reparameterization at full lane width (no lane slices):
    #   lanes 0:Z   -> mu + exp(sigma/2) * eps
    #   lane Z      -> 0 + exp(0) * 1 = 1     (picks up -b3' in the reduce)
    #   other lanes -> finite junk, multiplied by exact 0 in the reduce
    z = mu + jnp.exp(sg) * x

    # fc3 + sigmoid with pre-negated weights/bias:
    #   nl = -(w3.z + b3)  ->  sigmoid = 1 / (1 + exp(nl))
    nl = jnp.sum(z * w_ref[4 * H + 2:4 * H + 3, :], axis=-1, keepdims=True)
    out_ref[...] = pl.reciprocal(1.0 + jnp.exp(nl), approx=True)


def pack_params(params):
    """Pack all 10 parameter arrays into ONE [4H+8, H] f32 buffer (call once).

    Requires hidden_dim % 8 == 0 (so the H-row weight blocks are sublane-tile
    aligned static views) and state_dim + z_dim + 1 <= hidden_dim (so the
    packed activation row [eps | 1 | state | pad] fits in H lanes).
    """
    (w1, b1, w2, b2, wmu, bmu, wsig, bsig, w3, b3) = params
    S, H = w1.shape
    Z = wmu.shape[1]
    assert H % 8 == 0, "hidden_dim must be a multiple of 8 for aligned row blocks"
    assert S + Z + 1 <= H, "packing layout requires state_dim + z_dim + 1 <= hidden_dim"
    f32 = jnp.float32

    # Block A: fc1 laid out against x_in = [eps | 1 | state | 0-pad].
    wA = jnp.zeros((H, H), f32)
    wA = wA.at[Z, :].set(b1[0].astype(f32))          # ones lane -> bias
    wA = wA.at[Z + 1:Z + 1 + S, :].set(w1.astype(f32))
    # Block B: fc2.
    wB = w2.astype(f32)
    # Block C: mu head (bmu folded into the fc3 bias below).
    wC = jnp.zeros((H, H), f32).at[:, 0:Z].set(wmu.astype(f32))
    # Block D: pre-scaled sigma head (0.5 folded in).
    wD = jnp.zeros((H, H), f32).at[:, 0:Z].set(0.5 * wsig.astype(f32))
    # Extras (padded to 8 rows for a clean sublane tile).
    b3p = (b3[0, 0] + (bmu @ w3)[0, 0]).astype(f32)  # b3 + w3.bmu
    extras = jnp.zeros((8, H), f32)
    extras = extras.at[0, :].set(b2[0].astype(f32))
    extras = extras.at[1, 0:Z].set(0.5 * bsig[0].astype(f32))
    extras = extras.at[2, 0:Z].set(-w3[:, 0].astype(f32))
    extras = extras.at[2, Z].set(-b3p)
    return jnp.concatenate([wA, wB, wC, wD, extras], axis=0)        # [4H+8, H]


def _pack_activations(state, eps, hidden_dim):
    """Build x_in = [eps | 1 | state | 0-pad] of shape [B, hidden_dim]."""
    B, S = state.shape
    Z = eps.shape[1]
    pad = hidden_dim - (S + Z + 1)
    parts = [eps, jnp.ones((B, 1), jnp.float32), state]
    if pad > 0:
        parts.append(jnp.zeros((B, pad), jnp.float32))
    return jnp.concatenate(parts, axis=1)


def variational_h_forward(state, eps, wpack):
    """state: [B, S] f32, eps: [B, Z] f32, wpack from pack_params(). -> [B, 1]."""
    B = state.shape[0]
    H = wpack.shape[1]
    x_in = _pack_activations(state, eps, H)

    vmem = pl.BlockSpec(memory_space=pltpu.MemorySpace.VMEM)
    return pl.pallas_call(
        variational_h_kernel,
        out_shape=jax.ShapeDtypeStruct((B, 1), jnp.float32),
        in_specs=[vmem, vmem],
        out_specs=vmem,
    )(x_in, wpack)


def init_params(key, state_dim, hidden_dim, z_dim):
    """Deterministic init mimicking PyTorch nn.Linear default U(-1/sqrt(fan_in), +)."""
    def linear(k, fan_in, fan_out):
        kw, kb = jax.random.split(k)
        bound = 1.0 / jnp.sqrt(fan_in)
        # stored as [in, out] (pre-transposed from PyTorch's [out, in])
        w = jax.random.uniform(kw, (fan_in, fan_out), jnp.float32, -bound, bound)
        b = jax.random.uniform(kb, (1, fan_out), jnp.float32, -bound, bound)
        return w, b

    ks = jax.random.split(key, 5)
    w1, b1 = linear(ks[0], state_dim, hidden_dim)      # fc1 (action_dim = 0)
    w2, b2 = linear(ks[1], hidden_dim, hidden_dim)     # fc2
    wmu, bmu = linear(ks[2], hidden_dim, z_dim)        # mu head
    wsig, bsig = linear(ks[3], hidden_dim, z_dim)      # sigma head
    w3, b3 = linear(ks[4], z_dim, 1)                   # fc3
    return (w1, b1, w2, b2, wmu, bmu, wsig, bsig, w3, b3)


if __name__ == "__main__":
    # Small shapes consistent with the module: batch=8, state_dim=16,
    # hidden_dim=32, z_dim=8 (action_dim=0 inside VariationalH).
    B, STATE_DIM, HIDDEN_DIM, Z_DIM = 8, 16, 32, 8

    key = jax.random.PRNGKey(0)
    k_params, k_state, k_eps = jax.random.split(key, 3)

    params = init_params(k_params, STATE_DIM, HIDDEN_DIM, Z_DIM)
    state = jax.random.normal(k_state, (B, STATE_DIM), jnp.float32)
    eps = jax.random.normal(k_eps, (B, Z_DIM), jnp.float32)  # randn_like(std)

    # Pack ONCE at init/update time (hoisted out of the forward path).
    wpack = jax.block_until_ready(pack_params(params))

    forward = jax.jit(variational_h_forward)
    out = jax.block_until_ready(forward(state, eps, wpack))

    # Pure-JAX reference of the same math on the UNPACKED params.
    (w1, b1, w2, b2, wmu, bmu, wsig, bsig, w3, b3) = params
    h1 = jnp.maximum(state @ w1 + b1, 0.0)
    h2 = jnp.maximum(h1 @ w2 + b2, 0.0)
    mu = h2 @ wmu + bmu
    sigma = h2 @ wsig + bsig
    z = mu + jnp.exp(sigma / 2) * eps
    ref = jax.nn.sigmoid(z @ w3 + b3)

    assert out.shape == (B, 1), out.shape
    # Tolerance accounts for the approximate EUP reciprocal in the sigmoid tail.
    assert jnp.allclose(out, ref, atol=2e-3, rtol=2e-3), "mismatch vs reference"
    print("KERNEL_OK")
</pallas_src>

<mosaic_0001>
module attributes {stable_mosaic.version = 11 : i64} {
  func.func @variational_h_kernel(%arg0: memref<8x32xf32, #tpu.memory_space<vmem>>, %arg1: memref<136x32xf32, #tpu.memory_space<vmem>>, %arg2: memref<8x1xf32, #tpu.memory_space<vmem>>) attributes {dimension_semantics = [], scalar_prefetch = 0 : i64, scratch_operands = 0 : i64, tpu.core_type = #tpu.core_type<tc>} {
    %c0 = arith.constant 0 : index
    %c0_0 = arith.constant 0 : index
    %0 = vector.load %arg0[%c0, %c0_0] : memref<8x32xf32, #tpu.memory_space<vmem>>, vector<8x32xf32>
    %c0_1 = arith.constant 0 : index
    %c0_2 = arith.constant 0 : index
    %1 = vector.load %arg1[%c0_1, %c0_2] : memref<136x32xf32, #tpu.memory_space<vmem>>, vector<32x32xf32>
    %cst = arith.constant dense<0.000000e+00> : vector<8x32xf32>
    %2 = tpu.matmul %0, %1, %cst {dimension_numbers = #tpu.dot_dimension_numbers<[1], [0], [0], [1], [0, 0, 1, 1], [], []>} : vector<8x32xf32>, vector<32x32xf32>, vector<8x32xf32> -> vector<8x32xf32>
    %cst_3 = arith.constant 0.000000e+00 : f32
    %3 = vector.broadcast %cst_3 : f32 to vector<8x32xf32>
    %4 = arith.maximumf %2, %3 : vector<8x32xf32>
    %c32 = arith.constant 32 : index
    %c0_4 = arith.constant 0 : index
    %5 = vector.load %arg1[%c32, %c0_4] : memref<136x32xf32, #tpu.memory_space<vmem>>, vector<32x32xf32>
    %cst_5 = arith.constant dense<0.000000e+00> : vector<8x32xf32>
    %6 = tpu.matmul %4, %5, %cst_5 {dimension_numbers = #tpu.dot_dimension_numbers<[1], [0], [0], [1], [0, 0, 1, 1], [], []>} : vector<8x32xf32>, vector<32x32xf32>, vector<8x32xf32> -> vector<8x32xf32>
    %c128 = arith.constant 128 : index
    %c0_6 = arith.constant 0 : index
    %7 = vector.load %arg1[%c128, %c0_6] : memref<136x32xf32, #tpu.memory_space<vmem>>, vector<1x32xf32>
    %8 = vector.broadcast %7 : vector<1x32xf32> to vector<8x32xf32>
    %9 = arith.addf %6, %8 : vector<8x32xf32>
    %cst_7 = arith.constant 0.000000e+00 : f32
    %10 = vector.broadcast %cst_7 : f32 to vector<8x32xf32>
    %11 = arith.maximumf %9, %10 : vector<8x32xf32>
    %c64 = arith.constant 64 : index
    %c0_8 = arith.constant 0 : index
    %12 = vector.load %arg1[%c64, %c0_8] : memref<136x32xf32, #tpu.memory_space<vmem>>, vector<32x32xf32>
    %cst_9 = arith.constant dense<0.000000e+00> : vector<8x32xf32>
    %13 = tpu.matmul %11, %12, %cst_9 {dimension_numbers = #tpu.dot_dimension_numbers<[1], [0], [0], [1], [0, 0, 1, 1], [], []>} : vector<8x32xf32>, vector<32x32xf32>, vector<8x32xf32> -> vector<8x32xf32>
    %c96 = arith.constant 96 : index
    %c0_10 = arith.constant 0 : index
    %14 = vector.load %arg1[%c96, %c0_10] : memref<136x32xf32, #tpu.memory_space<vmem>>, vector<32x32xf32>
    %cst_11 = arith.constant dense<0.000000e+00> : vector<8x32xf32>
    %15 = tpu.matmul %11, %14, %cst_11 {dimension_numbers = #tpu.dot_dimension_numbers<[1], [0], [0], [1], [0, 0, 1, 1], [], []>} : vector<8x32xf32>, vector<32x32xf32>, vector<8x32xf32> -> vector<8x32xf32>
    %c129 = arith.constant 129 : index
    %c0_12 = arith.constant 0 : index
    %16 = vector.load %arg1[%c129, %c0_12] : memref<136x32xf32, #tpu.memory_space<vmem>>, vector<1x32xf32>
    %17 = vector.broadcast %16 : vector<1x32xf32> to vector<8x32xf32>
    %18 = arith.addf %15, %17 : vector<8x32xf32>
    %19 = math.exp %18 : vector<8x32xf32>
    %20 = arith.mulf %19, %0 : vector<8x32xf32>
    %21 = arith.addf %13, %20 : vector<8x32xf32>
    %c130 = arith.constant 130 : index
    %c0_13 = arith.constant 0 : index
    %22 = vector.load %arg1[%c130, %c0_13] : memref<136x32xf32, #tpu.memory_space<vmem>>, vector<1x32xf32>
    %23 = vector.broadcast %22 : vector<1x32xf32> to vector<8x32xf32>
    %24 = arith.mulf %21, %23 : vector<8x32xf32>
    %cst_14 = arith.constant dense<0.000000e+00> : vector<8xf32>
    %25 = vector.multi_reduction <add>, %24, %cst_14 [1] : vector<8x32xf32> to vector<8xf32>
    %26 = vector.shape_cast %25 : vector<8xf32> to vector<8x1xf32>
    %27 = math.exp %26 : vector<8x1xf32>
    %cst_15 = arith.constant 1.000000e+00 : f32
    %28 = vector.broadcast %cst_15 : f32 to vector<8x1xf32>
    %29 = arith.addf %28, %27 : vector<8x1xf32>
    %30 = tpu.reciprocal %29 {approx = true} : vector<8x1xf32> -> vector<8x1xf32>
    %c0_16 = arith.constant 0 : index
    %c0_17 = arith.constant 0 : index
    %31 = vector.load %arg2[%c0_16, %c0_17] : memref<8x1xf32, #tpu.memory_space<vmem>>, vector<8x1xf32>
    tpu.vector_store %arg2[%c0_16, %c0_17], %30 {strides = array<i32>} : memref<8x1xf32, #tpu.memory_space<vmem>>, vector<8x1xf32>,
    return
  }
}

</mosaic_0001>

<bundles_post_ra>
// kernel: variational_h_forward.1
= control target key start
LH: loop header
LB: loop body
LE: loop exit
PB: predicated region body
PF: predicated region fallthrough
CT: control target
= control target key end

     0   :  { %v456_v0 = vmov 0.0|0.0   ;;  %vm457_vm0 = vmmov 0   ;;  %v458_v4 = vmov 0.0   ;;  %vm16_vm1 = vcmask 261120   ;;  %s546_s1 = inlined_call_operand.vmem [shape: f32[136,32], index: 1, kind: input, shape index: {}]   ;;  %s547_s0 = inlined_call_operand.vmem [shape: f32[8,32], index: 0, kind: input, shape index: {}]   ;;  %s548_s2 = inlined_call_operand.vmem [shape: f32[8,1], index: 2, kind: output, shape index: {}]  }
   0x1   :  { %423 = vmatprep.subr.bf16.mxu0 %v456_v0  ;;  %v12_v1 = vld [vmem:[%s546_s1] sm:$0xff]  ;;  %v13_v2 = vld [vmem:[%s546_s1 + $0x8] sm:$0xff]  ;;  %v14_v3 = vld [vmem:[%s546_s1 + $0x10] sm:$0xff]  ;;  %387 = vmatprep.mubr.msk.f32.mxu0 %vm457_vm0, %v458_v4  ;;  %vm346_vm2 = vcmask 7168  }
   0x2   :  { %v424_v5 = vpack.c.bf16 %v13_v2, %v12_v1  ;;  %v15_v6 = vld [vmem:[%s546_s1 + $0x18] sm:$0xff]  ;;  %429 = vmatprep.subr.bf16.mxu1 %v456_v0  ;;  %v91_v7 = vld [vmem:[%s546_s1 + $0x20] sm:$0xff]  ;;  %398 = vmatprep.mubr.msk.f32.mxu1 %vm457_vm0, %v458_v4  ;;  %v92_v8 = vld [vmem:[%s546_s1 + $0x28] sm:$0xff] }
   0x3   :  { %v427_v9 = vpack.c.bf16 %v15_v6, %v14_v3  ;;  %v430_v10 = vpack.c.bf16 %v92_v8, %v91_v7  ;;  %v11_v11 = vld [vmem:[%s547_s0] sm:$0xff]  ;;  %v93_v12 = vld [vmem:[%s546_s1 + $0x30] sm:$0xff]  ;;  %v94_v13 = vld [vmem:[%s546_s1 + $0x38] sm:$0xff] }
   0x4   :  { %425 = vmatpush3.bf16.msra.mxu0 %v424_v5  ;;  %v433_v14 = vpack.c.bf16 %v94_v13, %v93_v12  ;;  %v178_v15 = vld [vmem:[%s546_s1 + $0x60] sm:$0xff]  ;;  %v179_v16 = vld [vmem:[%s546_s1 + $0x68] sm:$0xff]  ;;  %v180_v24 = vld [vmem:[%s546_s1 + $0x70] sm:$0xff] }
   0x5   :  { %426 = vmatprep.subr.bf16.mxu0 %v456_v0  ;;  %431 = vmatpush3.bf16.msra.mxu1 %v430_v10  ;;  %v436_v17 = vpack.c.bf16 %v179_v16, %v178_v15  ;;  %v174_v18 = vld [vmem:[%s546_s1 + $0x40] sm:$0xff]  ;;  %v175_v19 = vld [vmem:[%s546_s1 + $0x48] sm:$0xff]  ;;  %v181_v25 = vld [vmem:[%s546_s1 + $0x78] sm:$0xff] }
   0x6   :  { %432 = vmatprep.subr.bf16.mxu1 %v456_v0  ;;  %v442_v21 = vpack.c.bf16 %v175_v19, %v174_v18  ;;  %v176_v26 = vld [vmem:[%s546_s1 + $0x50] sm:$0xff]  ;;  %v439_v27 = vpack.c.bf16 %v181_v25, %v180_v24  ;;  %v177_v28 = vld [vmem:[%s546_s1 + $0x58] sm:$0xff]  ;;  %v353_v30 = vld [vmem:[%s546_s1 + $0x80] ss:$0 sm:$0xff] }
   0x7   :  { %v445_v29 = vpack.c.bf16 %v177_v28, %v176_v26  ;;  %v355_v35 = vld [vmem:[%s546_s1 + $0x81] ss:$0 sm:$0xff]  ;;  %v358_v44 = vld [vmem:[%s546_s1 + $0x82] ss:$0 sm:$0xff] }
   0x8   :  { %428 = vmatpush3.bf16.msra.mxu0 %v427_v9 }
   0x9   :  { %435 = vmatprep.subr.bf16.mxu0 %v456_v0  ;;  %434 = vmatpush3.bf16.msra.mxu1 %v433_v14 }
   0xa   :  { %441 = vmatprep.subr.bf16.mxu1 %v456_v0 }
   0xb   :  { %388 = vmatmul.mubr.msk.f32.vlgmr.msra.gmra.mrb[0].mxu0 %vm16_vm1, %v11_v11 }
   0xc   :  { %409 = vmatprep.mubr.msk.f32.mxu0 %vm457_vm0, %v458_v4  ;;  %437 = vmatpush3.bf16.msra.mxu0 %v436_v17 }
   0xd   :  { %438 = vmatprep.subr.bf16.mxu0 %v456_v0 }
  0x10   :  { %440 = vmatpush3.bf16.msra.mxu0 %v439_v27 }
  0xde   :  { %v86_v20 = vpop.f32.mrb[0].mxu0 }
  0xdf   :  { %v90_v22 = vmax.f32 %v86_v20, 0.0  ;;  %v389_v23 = vpop.f32.mrb[1].mxu0 }
  0xe1   :  { %399 = vmatmul.mubr.msk.f32.vlgmr.msra.gmra.mrb[0].mxu1 %vm16_vm1, %v90_v22 }
  0xe2   :  { %443 = vmatpush3.bf16.msra.mxu1 %v442_v21  ;;  %420 = vmatprep.mubr.msk.f32.mxu1 %vm457_vm0, %v458_v4 }
  0xe3   :  { %444 = vmatprep.subr.bf16.mxu1 %v456_v0 }
  0xe6   :  { %446 = vmatpush3.bf16.msra.mxu1 %v445_v29 }
 0x1b4   :  { %v169_v31 = vpop.f32.mrb[0].mxu1 }
 0x1b5   :  { %v170_v32 = vadd.f32 %v353_v30, %v169_v31  ;;  %v400_v33 = vpop.f32.mrb[1].mxu1 }
 0x1b7   :  { %v173_v34 = vmax.f32 %v170_v32, 0.0 }
 0x1b9   :  { %410 = vmatmul.mubr.msk.f32.vlgmr.msra.gmra.mrb[2].mxu0 %vm16_vm1, %v173_v34  ;;  %421 = vmatmul.mubr.msk.f32.vlgmr.msra.gmra.mrb[2].mxu1 %vm16_vm1, %v173_v34 }
 0x28c   :  { %v256_v36 = vpop.f32.mrb[2].mxu0  ;;  %v329_v37 = vpop.f32.mrb[2].mxu1 }
 0x28d   :  { %v257_v38 = vadd.f32 %v355_v35, %v256_v36  ;;  %v411_v39 = vpop.f32.mrb[3].mxu0  ;;  %v422_v40 = vpop.f32.mrb[3].mxu1 }
 0x28f   :  { %v260_v41 = vmul.f32 1.442695, %v257_v38 }
 0x291   :  { %450 = vpow2.f32 %v260_v41 }
 0x29b   :  { %v451_v42 = vpop.eup %450 }
 0x29c   :  { %v262_v43 = vmul.f32 %v451_v42, %v11_v11 }
 0x29e   :  { %v330_v45 = vadd.f32 %v329_v37, %v262_v43 }
 0x2a0   :  { %v338_v46 = vmul.f32 %v358_v44, %v330_v45 }
 0x2a2   :  { %v339_v47 = vsel %vm16_vm1, %v338_v46, 0.0 }
 0x2a3   :  { %340 = vadd.xlane.f32.xlu0 %v339_v47 }
 0x330   :  { %v341_v48 = vpop.xlane.xlu0 %340 }
 0x331   :  { %v342_v49 = vmul.f32 1.442695, %v341_v48 }
 0x333   :  { %452 = vpow2.f32 %v342_v49 }
 0x33d   :  { %v453_v50 = vpop.eup %452 }
 0x33e   :  { %v344_v51 = vadd.f32 1.0, %v453_v50 }
 0x340   :  { %454 = vrcp.f32 %v344_v51 }
 0x34a   :  { %v455_v52 = vpop.eup %454 }
 0x34b   :  { %347 = vst.msk [vmem:[%s548_s2] sm:$0xff] %vm346_vm2, %v455_v52 }

</bundles_post_ra>
